<compile_context>
chip_gen: v7x
topology: tpu7x:2x2x1
jax: 0.10.0
libtpu: 0.0.40
codegen_flags: <defaults>
</compile_context>

<pallas_src>
import functools

import jax
import jax.numpy as jnp
import numpy as np
from jax import lax
from jax.experimental import pallas as pl
from jax.experimental.pallas import tpu as pltpu

EPS = 1e-8        # module-level eps in the reference
MARGIN = 1.0      # see TODO(synk) above

_NEG = -1e30      # sentinel: "(i, j) is not a valid anchor-positive pair"
_POS = 1e30       # sentinel: "(i, k) is not a valid anchor-negative pair"


def _round_up(x, m):
    return ((x + m - 1) // m) * m


def _triplet_loss_kernel(emb_ref, lab_ref, out_ref,
                         dpos_sc, dneg_sc, sum_sc, cnt_sc,
                         *, margin, tm, tj):
    step = pl.program_id(0)
    b = emb_ref.shape[0]
    b_pad = dpos_sc.shape[0]

    # ---- one-time init (grid step 0): distances + factorized masks + margin ----
    @pl.when(step == 0)
    def _init():
        x = emb_ref[...]                                              # (B, E) native dtype
        xf = x.astype(jnp.float32)
        lab = lab_ref[...]                                            # (1, B)

        # gram = x @ x.T without forming x.T: contract last dims on the MXU.
        gram = lax.dot_general(x, x,
                               dimension_numbers=(((1,), (1,)), ((), ())),
                               preferred_element_type=jnp.float32)    # (B, B)
        sq = jnp.sum(xf * xf, axis=-1, keepdims=True)                 # (B, 1)
        norms = jnp.sqrt(sq)
        # Exact torch semantics: cos_sim = <xi,xj> / max(||xi||*||xj||, eps).
        denom = jnp.maximum(norms * jnp.transpose(norms), EPS)        # (B, B)
        dist = 1.0 - gram / denom                                     # (B, B)

        row = lax.broadcasted_iota(jnp.int32, (b, b), 0)
        col = lax.broadcasted_iota(jnp.int32, (b, b), 1)
        labels_equal = jnp.transpose(lab) == lab                      # (B, B)
        ap = jnp.logical_and(labels_equal, row != col)   # valid anchor/positive pair
        an = jnp.logical_not(labels_equal)                # valid anchor/negative pair
        # mask[i,j,k] = ap[i,j] & an[i,k] (i!=k and j!=k follow from the labels).
        # Fold mask AND margin into sentinel distances so the per-step hinge does
        # both the masking and the margin add for free.
        if b_pad > b:   # padded anchor rows must contribute nothing
            dpos_sc[...] = jnp.full((b_pad, b), _NEG, jnp.float32)
            dneg_sc[...] = jnp.full((b_pad, b), _POS, jnp.float32)
        dpos_sc[pl.ds(0, b), :] = jnp.where(ap, dist + margin, _NEG)
        dneg_sc[pl.ds(0, b), :] = jnp.where(an, dist, _POS)
        sum_sc[...] = jnp.zeros_like(sum_sc)
        cnt_sc[...] = jnp.zeros_like(cnt_sc)

    # ---- per-anchor-block hot path ---------------------------------------------
    # Layout: negatives (k) on lanes, positives (j) on sublanes, anchors (a) as
    # vreg repeats.  The anchor-axis reduction is pure VALU adds; the positive axis
    # is statically chunked so the live hinge slab stays bounded instead of a large
    # spilled (tm, B, B) temporary.
    r0 = pl.multiple_of(step * tm, tm)
    dn = dneg_sc[pl.ds(r0, tm), :]                        # (tm, B), hoisted over chunks
    for j0 in range(0, b, tj):                            # static chunk loop
        tjc = min(tj, b - j0)
        dpm = dpos_sc[pl.ds(r0, tm), pl.ds(j0, tjc)]      # (tm, tjc), margin folded in
        d = dpm[:, :, None] - dn[:, None, :]              # (tm, tjc, B)
        s_part = jnp.sum(jnp.maximum(d, 0.0), axis=0)     # (tjc, B) VALU-only reduce
        c_part = jnp.sum((d > EPS).astype(jnp.float32), axis=0)
        sum_sc[pl.ds(j0, tjc), :] = sum_sc[pl.ds(j0, tjc), :] + s_part
        cnt_sc[pl.ds(j0, tjc), :] = cnt_sc[pl.ds(j0, tjc), :] + c_part

    # ---- finalize on the last grid step: single XLU reduce + divide -------------
    @pl.when(step == pl.num_programs(0) - 1)
    def _fin():
        total = jnp.sum(sum_sc[...])
        npos = jnp.sum(cnt_sc[...])
        out_ref[...] = jnp.reshape(total / (npos + EPS), (1, 1))


def _pick_tiles(b, anchor_tile=None):
    """Anchor tile tm (multiple of 8, >= 8) and positive-axis chunk tj."""
    bp8 = _round_up(b, 8)
    if anchor_tile is None:
        tm = min(bp8, 32)
    else:
        tm = min(bp8, _round_up(max(int(anchor_tile), 1), 8))
    if b <= 8:
        tj = b
    else:
        budget = (512 * 1024) // 4            # ~512 KiB f32 live hinge slab
        tj = max(8, ((budget // max(tm * b, 1)) // 8) * 8)
        tj = max(tj, _round_up(-(-b // 64), 8))   # cap static unroll at ~64 chunks
        tj = min(tj, b)
    return tm, tj


def batch_all_triplet_loss(embeddings, labels, margin=MARGIN, *, anchor_tile=None):
    """JAX/Pallas equivalent of BatchAllTtripletLoss.forward.

    embeddings: (B, E) float array (native dtype; f32 or bf16)
    labels:     (B,)   integer array
    returns scalar float32 loss
    """
    B, E = embeddings.shape
    tm, tj = _pick_tiles(B, anchor_tile)
    num_blocks = -(-B // tm)
    b_pad = num_blocks * tm
    labels2d = labels.reshape(1, B).astype(jnp.int32)

    emb_bytes = np.dtype(embeddings.dtype).itemsize
    footprint = ((2 * b_pad * B + 2 * B * B) * 4          # dist tiles + wide accumulators
                 + 2 * B * E * emb_bytes + 2 * B * 4      # double-buffered inputs
                 + 2 * tm * tj * B * 4)                   # slab spill headroom
    vmem_limit = int(min(64 << 20, max(32 << 20, 2 * footprint + (4 << 20))))

    kernel = functools.partial(_triplet_loss_kernel,
                               margin=float(margin), tm=tm, tj=tj)
    out = pl.pallas_call(
        kernel,
        out_shape=jax.ShapeDtypeStruct((1, 1), jnp.float32),
        grid_spec=pltpu.PrefetchScalarGridSpec(
            num_scalar_prefetch=0,
            grid=(num_blocks,),
            in_specs=[
                pl.BlockSpec((B, E), lambda i: (0, 0)),   # resident across the grid
                pl.BlockSpec((1, B), lambda i: (0, 0)),
            ],
            out_specs=pl.BlockSpec((1, 1), lambda i: (0, 0)),
            scratch_shapes=[
                pltpu.VMEM((b_pad, B), jnp.float32),      # masked dist + margin (anchor-positive)
                pltpu.VMEM((b_pad, B), jnp.float32),      # masked dist (anchor-negative)
                pltpu.VMEM((B, B), jnp.float32),          # wide running sum accumulator
                pltpu.VMEM((B, B), jnp.float32),          # wide running count accumulator
            ]),
        compiler_params=pltpu.CompilerParams(
            # Anchor axis carries resident scratch (step-0 init + accumulators),
            # so it must stay "arbitrary"; see TODO(synk) on the v7x megacore split.
            dimension_semantics=("arbitrary",),
            vmem_limit_bytes=vmem_limit),
    )(embeddings, labels2d)
    return out[0, 0]


def _reference(embeddings, labels, margin=MARGIN):
    """Pure-JAX reference matching the PyTorch forward semantics."""
    x = embeddings.astype(jnp.float32)
    norms = jnp.sqrt(jnp.sum(x * x, axis=-1, keepdims=True))
    sim = (x @ x.T) / jnp.maximum(norms * norms.T, EPS)
    dist = 1.0 - sim
    t = dist[:, :, None] - dist[:, None, :] + margin
    B = x.shape[0]
    idx = jnp.arange(B)
    neq = idx[:, None] != idx[None, :]
    distinct = neq[:, :, None] & neq[:, None, :] & neq[None, :, :]
    leq = labels[:, None] == labels[None, :]
    valid = leq[:, :, None] & ~leq[:, None, :]
    mask = (distinct & valid).astype(jnp.float32)
    t = jnp.maximum(t * mask, 0.0)
    num_pos = jnp.sum((t > EPS).astype(jnp.float32))
    return jnp.sum(t) / (num_pos + EPS)


if __name__ == "__main__":
    key = jax.random.PRNGKey(0)
    k1, k2, k3, k4 = jax.random.split(key, 4)

    # Case 1: single anchor block (B=8, E=32).
    emb1 = jax.random.normal(k1, (8, 32), dtype=jnp.float32)
    lab1 = jax.random.randint(k2, (8,), 0, 3, dtype=jnp.int32)
    loss1 = jax.block_until_ready(batch_all_triplet_loss(emb1, lab1))
    ref1 = jax.block_until_ready(_reference(emb1, lab1))
    np.testing.assert_allclose(np.asarray(loss1), np.asarray(ref1), rtol=1e-5, atol=1e-6)

    # Case 2: multiple anchor blocks (B=16, E=128, anchor tile 8 -> 2 grid steps).
    emb2 = jax.random.normal(k3, (16, 128), dtype=jnp.float32)
    lab2 = jax.random.randint(k4, (16,), 0, 4, dtype=jnp.int32)
    loss2 = jax.block_until_ready(batch_all_triplet_loss(emb2, lab2, anchor_tile=8))
    ref2 = jax.block_until_ready(_reference(emb2, lab2))
    np.testing.assert_allclose(np.asarray(loss2), np.asarray(ref2), rtol=1e-5, atol=1e-6)

    print("KERNEL_OK")
</pallas_src>

<mosaic_0001>
module attributes {stable_mosaic.version = 11 : i64} {
  func.func @_triplet_loss_kernel(%arg0: i32, %arg1: memref<8x32xf32, #tpu.memory_space<vmem>>, %arg2: memref<1x8xi32, #tpu.memory_space<vmem>>, %arg3: memref<1x1xf32, #tpu.memory_space<vmem>>, %arg4: memref<8x8xf32, #tpu.memory_space<vmem>>, %arg5: memref<8x8xf32, #tpu.memory_space<vmem>>, %arg6: memref<8x8xf32, #tpu.memory_space<vmem>>, %arg7: memref<8x8xf32, #tpu.memory_space<vmem>>) attributes {dimension_semantics = [#tpu.dimension_semantics<arbitrary>], iteration_bounds = array<i64: 1>, scalar_prefetch = 0 : i64, scratch_operands = 4 : i64, tpu.core_type = #tpu.core_type<tc>, window_params = [{pipeline_mode = #tpu.pipeline_mode<synchronous>, transform_indices = @transform_0, window_bounds = array<i64: 8, 32>}, {pipeline_mode = #tpu.pipeline_mode<synchronous>, transform_indices = @transform_1, window_bounds = array<i64: 1, 8>}, {pipeline_mode = #tpu.pipeline_mode<synchronous>, transform_indices = @transform_2, window_bounds = array<i64: 1, 1>}]} {
    %c0_i32 = arith.constant 0 : i32
    %0 = arith.cmpi eq, %arg0, %c0_i32 : i32
    %1 = arith.extui %0 : i1 to i32
    %c0_i32_0 = arith.constant 0 : i32
    %2 = arith.cmpi ne, %1, %c0_i32_0 : i32
    scf.if %2 {
      %c0_15 = arith.constant 0 : index
      %c0_16 = arith.constant 0 : index
      %31 = vector.load %arg1[%c0_15, %c0_16] : memref<8x32xf32, #tpu.memory_space<vmem>>, vector<8x32xf32>
      %c0_17 = arith.constant 0 : index
      %c0_18 = arith.constant 0 : index
      %32 = vector.load %arg2[%c0_17, %c0_18] : memref<1x8xi32, #tpu.memory_space<vmem>>, vector<1x8xi32>
      %cst_19 = arith.constant dense<0.000000e+00> : vector<8x8xf32>
      %33 = tpu.matmul %31, %31, %cst_19 {dimension_numbers = #tpu.dot_dimension_numbers<[1], [1], [0], [0], [0, 0, 1, 0], [], []>} : vector<8x32xf32>, vector<8x32xf32>, vector<8x8xf32> -> vector<8x8xf32>
      %34 = arith.mulf %31, %31 : vector<8x32xf32>
      %cst_20 = arith.constant dense<0.000000e+00> : vector<8xf32>
      %35 = vector.multi_reduction <add>, %34, %cst_20 [1] : vector<8x32xf32> to vector<8xf32>
      %36 = vector.shape_cast %35 : vector<8xf32> to vector<8x1xf32>
      %37 = math.sqrt %36 : vector<8x1xf32>
      %38 = tpu.transpose %37, [1, 0] : vector<8x1xf32> -> vector<1x8xf32>
      %39 = vector.broadcast %37 : vector<8x1xf32> to vector<8x8xf32>
      %40 = vector.broadcast %38 : vector<1x8xf32> to vector<8x8xf32>
      %41 = arith.mulf %39, %40 : vector<8x8xf32>
      %cst_21 = arith.constant 9.99999993E-9 : f32
      %42 = vector.broadcast %cst_21 : f32 to vector<8x8xf32>
      %43 = arith.maximumf %41, %42 : vector<8x8xf32>
      %44 = arith.divf %33, %43 : vector<8x8xf32>
      %cst_22 = arith.constant 1.000000e+00 : f32
      %45 = vector.broadcast %cst_22 : f32 to vector<8x8xf32>
      %46 = arith.subf %45, %44 : vector<8x8xf32>
      %47 = tpu.iota {dimensions = array<i32: 0>} : vector<8x8xi32>
      %48 = tpu.iota {dimensions = array<i32: 1>} : vector<8x8xi32>
      %49 = tpu.transpose %32, [1, 0] : vector<1x8xi32> -> vector<8x1xi32>
      %50 = vector.broadcast %49 : vector<8x1xi32> to vector<8x8xi32>
      %51 = vector.broadcast %32 : vector<1x8xi32> to vector<8x8xi32>
      %52 = arith.cmpi eq, %50, %51 : vector<8x8xi32>
      %53 = arith.cmpi ne, %47, %48 : vector<8x8xi32>
      %54 = arith.andi %52, %53 : vector<8x8xi1>
      %cst_23 = arith.constant dense<true> : vector<8x8xi1>
      %55 = arith.xori %52, %cst_23 : vector<8x8xi1>
      %cst_24 = arith.constant 1.000000e+00 : f32
      %56 = vector.broadcast %cst_24 : f32 to vector<8x8xf32>
      %57 = arith.addf %46, %56 : vector<8x8xf32>
      %cst_25 = arith.constant -1.000000e+30 : f32
      %58 = vector.broadcast %cst_25 : f32 to vector<8x8xf32>
      %59 = arith.select %54, %57, %58 : vector<8x8xi1>, vector<8x8xf32>
      %c0_26 = arith.constant 0 : index
      %c0_27 = arith.constant 0 : index
      %60 = vector.load %arg4[%c0_26, %c0_27] : memref<8x8xf32, #tpu.memory_space<vmem>>, vector<8x8xf32>
      tpu.vector_store %arg4[%c0_26, %c0_27], %59 {strides = array<i32>} : memref<8x8xf32, #tpu.memory_space<vmem>>, vector<8x8xf32>,
      %cst_28 = arith.constant 1.000000e+30 : f32
      %61 = vector.broadcast %cst_28 : f32 to vector<8x8xf32>
      %62 = arith.select %55, %46, %61 : vector<8x8xi1>, vector<8x8xf32>
      %c0_29 = arith.constant 0 : index
      %c0_30 = arith.constant 0 : index
      %63 = vector.load %arg5[%c0_29, %c0_30] : memref<8x8xf32, #tpu.memory_space<vmem>>, vector<8x8xf32>
      tpu.vector_store %arg5[%c0_29, %c0_30], %62 {strides = array<i32>} : memref<8x8xf32, #tpu.memory_space<vmem>>, vector<8x8xf32>,
      %cst_31 = arith.constant 0.000000e+00 : f32
      %64 = vector.broadcast %cst_31 : f32 to vector<8x8xf32>
      %c0_32 = arith.constant 0 : index
      %c0_33 = arith.constant 0 : index
      %65 = vector.load %arg6[%c0_32, %c0_33] : memref<8x8xf32, #tpu.memory_space<vmem>>, vector<8x8xf32>
      tpu.vector_store %arg6[%c0_32, %c0_33], %64 {strides = array<i32>} : memref<8x8xf32, #tpu.memory_space<vmem>>, vector<8x8xf32>,
      %cst_34 = arith.constant 0.000000e+00 : f32
      %66 = vector.broadcast %cst_34 : f32 to vector<8x8xf32>
      %c0_35 = arith.constant 0 : index
      %c0_36 = arith.constant 0 : index
      %67 = vector.load %arg7[%c0_35, %c0_36] : memref<8x8xf32, #tpu.memory_space<vmem>>, vector<8x8xf32>
      tpu.vector_store %arg7[%c0_35, %c0_36], %66 {strides = array<i32>} : memref<8x8xf32, #tpu.memory_space<vmem>>, vector<8x8xf32>,
    } else {
    }
    %c8_i32 = arith.constant 8 : i32
    %3 = arith.muli %arg0, %c8_i32 : i32
    %4 = tpu.assume_multiple %3, 8 : i32
    %5 = arith.index_cast %4 : i32 to index
    %c0 = arith.constant 0 : index
    %6 = vector.load %arg5[%5, %c0] : memref<8x8xf32, #tpu.memory_space<vmem>>, vector<8x8xf32>
    %7 = arith.index_cast %4 : i32 to index
    %c0_1 = arith.constant 0 : index
    %8 = vector.load %arg4[%7, %c0_1] : memref<8x8xf32, #tpu.memory_space<vmem>>, vector<8x8xf32>
    %9 = vector.shape_cast %8 : vector<8x8xf32> to vector<8x8x1xf32>
    %10 = vector.shape_cast %6 : vector<8x8xf32> to vector<8x1x8xf32>
    %11 = vector.broadcast %9 : vector<8x8x1xf32> to vector<8x8x8xf32>
    %12 = vector.broadcast %10 : vector<8x1x8xf32> to vector<8x8x8xf32>
    %13 = arith.subf %11, %12 : vector<8x8x8xf32>
    %cst = arith.constant 0.000000e+00 : f32
    %14 = vector.broadcast %cst : f32 to vector<8x8x8xf32>
    %15 = arith.maximumf %13, %14 : vector<8x8x8xf32>
    %cst_2 = arith.constant dense<0.000000e+00> : vector<8x8xf32>
    %16 = vector.multi_reduction <add>, %15, %cst_2 [0] : vector<8x8x8xf32> to vector<8x8xf32>
    %cst_3 = arith.constant 9.99999993E-9 : f32
    %17 = vector.broadcast %cst_3 : f32 to vector<8x8x8xf32>
    %18 = arith.cmpf ogt, %13, %17 : vector<8x8x8xf32>
    %19 = arith.extui %18 : vector<8x8x8xi1> to vector<8x8x8xi32>
    %20 = arith.sitofp %19 : vector<8x8x8xi32> to vector<8x8x8xf32>
    %cst_4 = arith.constant dense<0.000000e+00> : vector<8x8xf32>
    %21 = vector.multi_reduction <add>, %20, %cst_4 [0] : vector<8x8x8xf32> to vector<8x8xf32>
    %c0_5 = arith.constant 0 : index
    %c0_6 = arith.constant 0 : index
    %22 = vector.load %arg6[%c0_5, %c0_6] : memref<8x8xf32, #tpu.memory_space<vmem>>, vector<8x8xf32>
    %23 = arith.addf %22, %16 : vector<8x8xf32>
    %c0_7 = arith.constant 0 : index
    %c0_8 = arith.constant 0 : index
    %24 = vector.load %arg6[%c0_7, %c0_8] : memref<8x8xf32, #tpu.memory_space<vmem>>, vector<8x8xf32>
    tpu.vector_store %arg6[%c0_7, %c0_8], %23 {strides = array<i32>} : memref<8x8xf32, #tpu.memory_space<vmem>>, vector<8x8xf32>,
    %c0_9 = arith.constant 0 : index
    %c0_10 = arith.constant 0 : index
    %25 = vector.load %arg7[%c0_9, %c0_10] : memref<8x8xf32, #tpu.memory_space<vmem>>, vector<8x8xf32>
    %26 = arith.addf %25, %21 : vector<8x8xf32>
    %c0_11 = arith.constant 0 : index
    %c0_12 = arith.constant 0 : index
    %27 = vector.load %arg7[%c0_11, %c0_12] : memref<8x8xf32, #tpu.memory_space<vmem>>, vector<8x8xf32>
    tpu.vector_store %arg7[%c0_11, %c0_12], %26 {strides = array<i32>} : memref<8x8xf32, #tpu.memory_space<vmem>>, vector<8x8xf32>,
    %c0_i32_13 = arith.constant 0 : i32
    %28 = arith.cmpi eq, %arg0, %c0_i32_13 : i32
    %29 = arith.extui %28 : i1 to i32
    %c0_i32_14 = arith.constant 0 : i32
    %30 = arith.cmpi ne, %29, %c0_i32_14 : i32
    scf.if %30 {
      %c0_15 = arith.constant 0 : index
      %c0_16 = arith.constant 0 : index
      %31 = vector.load %arg6[%c0_15, %c0_16] : memref<8x8xf32, #tpu.memory_space<vmem>>, vector<8x8xf32>
      %32 = vector.shape_cast %31 : vector<8x8xf32> to vector<1x8x8xf32>
      %cst_17 = arith.constant dense<0.000000e+00> : vector<1xf32>
      %33 = vector.multi_reduction <add>, %32, %cst_17 [1, 2] : vector<1x8x8xf32> to vector<1xf32>
      %34 = vector.shape_cast %33 : vector<1xf32> to vector<1x1x1xf32>
      %35 = vector.extract %34[0, 0, 0] : f32 from vector<1x1x1xf32>
      %c0_18 = arith.constant 0 : index
      %c0_19 = arith.constant 0 : index
      %36 = vector.load %arg7[%c0_18, %c0_19] : memref<8x8xf32, #tpu.memory_space<vmem>>, vector<8x8xf32>
      %37 = vector.shape_cast %36 : vector<8x8xf32> to vector<1x8x8xf32>
      %cst_20 = arith.constant dense<0.000000e+00> : vector<1xf32>
      %38 = vector.multi_reduction <add>, %37, %cst_20 [1, 2] : vector<1x8x8xf32> to vector<1xf32>
      %39 = vector.shape_cast %38 : vector<1xf32> to vector<1x1x1xf32>
      %40 = vector.extract %39[0, 0, 0] : f32 from vector<1x1x1xf32>
      %cst_21 = arith.constant 9.99999993E-9 : f32
      %41 = arith.addf %40, %cst_21 : f32
      %42 = arith.divf %35, %41 : f32
      %43 = vector.broadcast %42 : f32 to vector<1x1xf32>
      %c0_22 = arith.constant 0 : index
      %c0_23 = arith.constant 0 : index
      %44 = vector.load %arg3[%c0_22, %c0_23] : memref<1x1xf32, #tpu.memory_space<vmem>>, vector<1x1xf32>
      tpu.vector_store %arg3[%c0_22, %c0_23], %43 {strides = array<i32>} : memref<1x1xf32, #tpu.memory_space<vmem>>, vector<1x1xf32>,
    } else {
    }
    return
  }
  func.func @transform_0(%arg0: i32) -> (i32, i32) {
    %c0_i32 = arith.constant 0 : i32
    %c0_i32_0 = arith.constant 0 : i32
    %c0_i32_1 = arith.constant 0 : i32
    return %c0_i32, %c0_i32_0 : i32, i32
  }
  func.func @transform_1(%arg0: i32) -> (i32, i32) {
    %c0_i32 = arith.constant 0 : i32
    %c0_i32_0 = arith.constant 0 : i32
    %c0_i32_1 = arith.constant 0 : i32
    return %c0_i32, %c0_i32_0 : i32, i32
  }
  func.func @transform_2(%arg0: i32) -> (i32, i32) {
    %c0_i32 = arith.constant 0 : i32
    %c0_i32_0 = arith.constant 0 : i32
    %c0_i32_1 = arith.constant 0 : i32
    return %c0_i32, %c0_i32_0 : i32, i32
  }
}

</mosaic_0001>

<bundles_post_ra>
// kernel: tpu_custom_call.1
= control target key start
LH: loop header
LB: loop body
LE: loop exit
PB: predicated region body
PF: predicated region fallthrough
CT: control target
= control target key end

     0   :  { %7 = vsyncpa [#allocation7], 0  ;;  %s672_s0 = inlined_call_operand.hbm [shape: f32[8,32], index: 0, kind: input, shape index: {}]   ;;  %s673_s1 = inlined_call_operand.vmem [shape: s32[1,8], index: 1, kind: input, shape index: {}]   ;;  %s674_s2 = inlined_call_operand.hbm [shape: f32[1,1], index: 2, kind: output, shape index: {}]  }
   0x1   :  { %8 = vsyncpa [#allocation8], 0  ;;  %s574_s9 = smov [#allocation6]   ;;  %s526_s13 = scalar_lea.hbm %s672_s0, 128 }
   0x2   :  { %s15_s10 = sshll.u32 %s574_s9, 4  ;;  %p527_p0 = scmp.ne.s32.totalorder %s672_s0, %s526_s13  ;;  %s16_s10 = int_to_ptr.vmem [resolvable:$true] %s15_s10 }
   0x3   :  { %p530_p1 = scmp.lt.u32.totalorder %s526_s13, %s672_s0 }
   0x5   :  { %p532_p2 = pnand %p530_p1, %p527_p0 }
   0x7   :  { %535 = shalt.err (!%p532_p2)
}
   0x8   :  { %s536_s18 = scalar_lea.vmem %s16_s10, 128  ;;  %p541_p4 = scmp.lt.s32.totalorder %s16_s10, %s16_s10 }
   0x9   :  { %p537_p3 = scmp.ne.s32.totalorder %s16_s10, %s536_s18  ;;  %p542_p5 = scmp.lt.s32.totalorder %s536_s18, %s536_s18 }
   0xb   :  { %p543_p6 = por %p542_p5, %p541_p4 }
   0xd   :  { %p544_p7 = pnand %p543_p6, %p537_p3 }
   0xf   :  { %547 = shalt.err (!%p544_p7)
}
  0x10   :  { %18 = dma.hbm_to_vmem [thread:$0]  %s672_s0, 128, %s16_s10, [#allocation7]  }
  0x11   :  { %570 = dma.done.wait [#allocation7], 128  }
  0x12   :  { %571 = vsyncadd [#allocation7], 4294967168  ;;  %v28_v0 = vld [vmem:[#allocation6] sm:$0xff]  ;;  %vm30_vm0 = vcmask 261120   ;;  %v575_v3 = vmov 0.0   ;;  %vm576_vm1 = vmmov 0   ;;  %v147_v15 = vlaneseq }
  0x13   :  { %v104_v1 = vmul.f32 %v28_v0, %v28_v0  ;;  %499 = vmatprep.subr.mxu0 %v575_v3  ;;  %501 = vmatprep.mubr.msk.f32.mxu0 %vm576_vm1, %v575_v3  ;;  %v577_v4 = vmov 0   ;;  %v29_v5 = vld [vmem:[%s673_s1] sm:$0x1]  ;;  %vm205_vm4 = vcmask 64512   ;;  %vm578_vm7 = vmmov 1   ;;  %s580_s24 = smov [#allocation9]  }
  0x14   :  { %500 = vmatpush3.xpose.msk.msra.mxu0 %vm30_vm0, %v28_v0  ;;  %517 = vset.pattern.permute.xlu1 %v577_v4  ;;  %209 = vst.msk [vmem:[#allocation4] sm:$0xff] %vm205_vm4, %v575_v3  ;;  %210 = vst.msk [vmem:[#allocation5] sm:$0xff] %vm205_vm4, %v575_v3  ;;  %v148_v16 = vshrl.u32 %v147_v15, 7  ;;  %v159_v24 = vand.u32 127, %v147_v15  ;;  %v579_v47 = vmov 1966171168  }
  0x15   :  { %v105_v2 = vsel %vm30_vm0, %v104_v1, 0.0  ;;  %v275_v48 = vunpack.c.l.s4 %v579_v47  ;;  %s478_s25 = sshll.u32 %s580_s24, 4  ;;  %s479_s25 = int_to_ptr.vmem [resolvable:$true] %s478_s25 }
  0x16   :  { %106 = vadd.xlane.f32.xlu0 %v105_v2  ;;  %v617_v18 = vsub.s32 0, %v148_v16  ;;  %vm200_vm6 = vcmp.ne.s32.totalorder %v148_v16, %v159_v24  ;;  %v225_v31 = vsub.s32 1, %v148_v16  ;;  %v260_v35 = vsub.s32 6, %v148_v16  ;;  %s548_s28 = scalar_lea.vmem %s479_s25, 16  ;;  %s552_s29 = scalar_lea.vmem %s479_s25, 32 }
  0x17   :  { %502 = vmatmul.mubr.msk.f32.vlgmr.msra.gmra.mrb[0].mxu0 %vm30_vm0, %v28_v0  ;;  %v232_v36 = vsub.s32 2, %v148_v16  ;;  %v239_v39 = vsub.s32 3, %v148_v16  ;;  %v246_v41 = vsub.s32 4, %v148_v16  ;;  %v253_v43 = vsub.s32 5, %v148_v16  ;;  %p549_p8 = scmp.ne.s32.totalorder %s479_s25, %s548_s28  ;;  %p553_p9 = scmp.lt.s32.totalorder %s479_s25, %s479_s25 }
  0x18   :  { %v198_v23 = vrot.slane %v29_v5, %v617_v18  ;;  %v267_v45 = vsub.s32 7, %v148_v16  ;;  %v276_v49 = vunpack.c.0.s8 %v275_v48  ;;  %p554_p10 = scmp.lt.s32.totalorder %s552_s29, %s548_s28 }
  0x1a   :  { %v279_v50 = vsub.s32 %v276_v49, %v148_v16  ;;  %p555_p11 = por %p554_p10, %p553_p9 }
  0x1c   :  { %p556_p12 = pnand %p555_p11, %p549_p8 }
  0x43   :  { %160 = vxpose.xlu0.b32.start.end [1/1] (short) (narrow) %v29_v5, 8 }
  0x6c   :  { %518 = vset.pattern.permute.xlu0 %v577_v4 }
  0xa3   :  { %v107_v6 = vpop.xlane.xlu0 %106 }
  0xa4   :  { %520 = vrsqrt.f32 %v107_v6  ;;  %vm110_vm2 = vcmp.eq.f32.partialorder %v107_v6, inf  ;;  %v113_v11 = vand.u32 2147483648, %v107_v6  ;;  %vm112_vm3 = vcmp.eq.f32.partialorder %v107_v6, 0.0 }
  0xae   :  { %v521_v8 = vpop.eup %520 }
  0xaf   :  { %v109_v9 = vmul.f32 %v521_v8, %v107_v6 }
  0xb1   :  { %v111_v10 = vsel %vm110_vm2, %v107_v6, %v109_v9  ;;  %vm470_vm2 = vcmask 0  }
  0xb2   :  { %v114_v12 = vsel %vm112_vm3, %v113_v11, %v111_v10 }
  0xc3   :  { %v176_v7 = vpop.trf.xlu0 }
  0xc4   :  { %193 = vperm.xlu1 %517, %v176_v7  }
  0xea   :  { %v100_v13 = vpop.f32.mrb[0].mxu0 }
  0xeb   :  { %v503_v14 = vpop.f32.mrb[1].mxu0 }
  0xed   :  { %115 = vxpose.xlu1.b32.start.end [1/1] (short) (narrow) %v114_v12, 8 }
 0x143   :  { %v194_v17 = vpop.permute.xlu1 %193 }
 0x144   :  { %vm199_vm5 = vcmp.eq.s32.totalorder %v194_v17, %v198_v23 }
 0x145   :  { %vm202_vm8 = vmxor %vm199_vm5, %vm578_vm7 }
 0x146   :  { %vm201_vm9 = vmand %vm199_vm5, %vm200_vm6 }
 0x16d   :  { %v131_v19 = vpop.trf.xlu1 }
 0x16e   :  { %v150_v20 = vrot.slane %v131_v19, %v617_v18 }
 0x170   :  { %v151_v21 = vmul.f32 %v150_v20, %v114_v12 }
 0x172   :  { %v152_v22 = vmax.f32 %v151_v21, 1e-08 }
 0x174   :  { %522 = vrcp.f32 %v152_v22 }
 0x17e   :  { %v523_v25 = vpop.eup %522 }
 0x17f   :  { %v154_v26 = vmul.f32 %v523_v25, %v100_v13 }
 0x181   :  { %v155_v27 = vsub.f32 1.0, %v154_v26 }
 0x183   :  { %v203_v28 = vadd.f32 1.0, %v155_v27  ;;  %v207_v29 = vsel %vm202_vm8, %v155_v27, 1e+30 }
 0x184   :  { %208 = vst.msk [vmem:[#allocation3] sm:$0xff] %vm205_vm4, %v207_v29 }
 0x185   :  { %v204_v30 = vsel %vm201_vm9, %v203_v28, -1e+30 }
 0x186   :  { %206 = vst.msk [vmem:[#allocation2] sm:$0xff] %vm205_vm4, %v204_v30 }
 0x18b   :  { %v213_v51 = vld [vmem:[#allocation3] sm:$0xff] }
 0x18c   :  { %v280_v52 = vrot.slane %v213_v51, %v279_v50  ;;  %v273_v54 = vcombine.high %v213_v51, %v213_v51 }
 0x18d   :  { %v215_v32 = vld [vmem:[#allocation2] sm:$0xff] }
 0x18e   :  { %v226_v33 = vrot.slane %v215_v32, %v225_v31  ;;  %v219_v34 = vrot.slane %v215_v32, %v617_v18  ;;  %v261_v37 = vrot.slane %v215_v32, %v260_v35  ;;  %v233_v38 = vrot.slane %v215_v32, %v232_v36 }
 0x18f   :  { %v240_v40 = vrot.slane %v215_v32, %v239_v39  ;;  %v247_v42 = vrot.slane %v215_v32, %v246_v41  ;;  %v254_v44 = vrot.slane %v215_v32, %v253_v43  ;;  %v268_v46 = vrot.slane %v215_v32, %v267_v45 }
 0x190   :  { %228 = vbcast.lane.b32.xlu0 %v226_v33, 256  ;;  %221 = vbcast.lane.b32.xlu1 %v219_v34, 256  ;;  %v288_v53 = vcombine.high %v280_v52, %v280_v52  ;;  %v296_v56 = vrot.slane %v280_v52, %v279_v50  ;;  %v287_v57 = vrot.slane %v273_v54, %v279_v50 }
 0x192   :  { %v310_v55 = vrot.slane %v288_v53, %v279_v50  ;;  %v325_v59 = vrot.slane %v296_v56, %v617_v18  ;;  %v318_v62 = vcombine.high %v296_v56, %v296_v56  ;;  %v303_v1 = vrot.slane %v287_v57, %v279_v50 }
 0x193   :  { %v289_v6 = vcombine.high %v287_v57, %v287_v57 }
 0x194   :  { %263 = vbcast.lane.b32.xlu0 %v261_v37, 256  ;;  %235 = vbcast.lane.b32.xlu1 %v233_v38, 256  ;;  %v329_v58 = vrot.slane %v310_v55, %v617_v18  ;;  %v320_v2 = vcombine.high %v310_v55, %v310_v55  ;;  %v333_v4 = vrot.slane %v318_v62, %v617_v18 }
 0x195   :  { %v319_v8 = vcombine.high %v303_v1, %v303_v1  ;;  %v341_v17 = vrot.slane %v303_v1, %v617_v18  ;;  %v317_v19 = vrot.slane %v289_v6, %v279_v50  ;;  %v436_v6 = vld [vmem:[#allocation5] sm:$0xff] }
 0x196   :  { %v337_v12 = vrot.slane %v320_v2, %v617_v18 }
 0x197   :  { %v349_v22 = vrot.slane %v319_v8, %v617_v18  ;;  %v345_v36 = vrot.slane %v317_v19, %v617_v18  ;;  %v321_v37 = vcombine.high %v317_v19, %v317_v19 }
 0x198   :  { %242 = vbcast.lane.b32.xlu1 %v240_v40, 256 }
 0x199   :  { %v353_v52 = vrot.slane %v321_v37, %v617_v18 }
 0x19c   :  { %249 = vbcast.lane.b32.xlu1 %v247_v42, 256 }
 0x1a0   :  { %256 = vbcast.lane.b32.xlu1 %v254_v44, 256 }
 0x1a4   :  { %270 = vbcast.lane.b32.xlu1 %v268_v46, 256 }
 0x202   :  { %v229_v60 = vpop.permute.xlu0 %228  ;;  %v222_v61 = vpop.permute.xlu1 %221 }
 0x203   :  { %v363_v63 = vsub.f32 %v229_v60, %v329_v58  ;;  %v362_v0 = vsub.f32 %v222_v61, %v325_v59 }
 0x205   :  { %vm395_vm10 = vcmp.gt.f32.partialorder %v363_v63, 1e-08  ;;  %vm394_vm11 = vcmp.gt.f32.partialorder %v362_v0, 1e-08  ;;  %v371_v7 = vmax.f32 %v363_v63, 0.0  ;;  %v370_v11 = vmax.f32 %v362_v0, 0.0 }
 0x206   :  { %v236_v5 = vpop.permute.xlu1 %235  ;;  %v490_v10 = vsel %vm395_vm10, 1.0, %v575_v3  ;;  %v489_v13 = vsel %vm394_vm11, 1.0, %v575_v3  ;;  %v264_v23 = vpop.permute.xlu0 %263 }
 0x207   :  { %v364_v9 = vsub.f32 %v236_v5, %v333_v4  ;;  %v380_v20 = vsel %vm205_vm4, %v371_v7, 0.0  ;;  %v419_v21 = vsel %vm205_vm4, %v490_v10, 0.0  ;;  %v379_v25 = vsel %vm205_vm4, %v370_v11, 0.0  ;;  %v433_v5 = vld [vmem:[#allocation4] sm:$0xff] }
 0x208   :  { %v418_v26 = vsel %vm205_vm4, %v489_v13, 0.0  ;;  %v368_v30 = vsub.f32 %v264_v23, %v349_v22  ;;  %v381_v34 = vadd.f32 %v380_v20, %v379_v25 }
 0x209   :  { %vm396_vm12 = vcmp.gt.f32.partialorder %v364_v9, 1e-08  ;;  %v372_v15 = vmax.f32 %v364_v9, 0.0  ;;  %v420_v35 = vadd.f32 %v419_v21, %v418_v26 }
 0x20a   :  { %v243_v14 = vpop.permute.xlu1 %242  ;;  %v491_v24 = vsel %vm396_vm12, 1.0, %v575_v3  ;;  %vm400_vm15 = vcmp.gt.f32.partialorder %v368_v30, 1e-08  ;;  %v376_v50 = vmax.f32 %v368_v30, 0.0 }
 0x20b   :  { %v365_v16 = vsub.f32 %v243_v14, %v337_v12  ;;  %v382_v31 = vsel %vm205_vm4, %v372_v15, 0.0  ;;  %v421_v32 = vsel %vm205_vm4, %v491_v24, 0.0  ;;  %v495_v53 = vsel %vm400_vm15, 1.0, %v575_v3 }
 0x20c   :  { %v383_v41 = vadd.f32 %v382_v31, %v381_v34  ;;  %v422_v42 = vadd.f32 %v421_v32, %v420_v35  ;;  %v390_v63 = vsel %vm205_vm4, %v376_v50, 0.0  ;;  %v429_v0 = vsel %vm205_vm4, %v495_v53, 0.0 }
 0x20d   :  { %v373_v27 = vmax.f32 %v365_v16, 0.0  ;;  %vm397_vm13 = vcmp.gt.f32.partialorder %v365_v16, 1e-08 }
 0x20e   :  { %v492_v28 = vsel %vm397_vm13, 1.0, %v575_v3  ;;  %v250_v29 = vpop.permute.xlu1 %249 }
 0x20f   :  { %v366_v33 = vsub.f32 %v250_v29, %v341_v17  ;;  %v384_v38 = vsel %vm205_vm4, %v373_v27, 0.0  ;;  %v423_v39 = vsel %vm205_vm4, %v492_v28, 0.0 }
 0x210   :  { %v385_v48 = vadd.f32 %v384_v38, %v383_v41  ;;  %v424_v49 = vadd.f32 %v423_v39, %v422_v42 }
 0x211   :  { %v374_v40 = vmax.f32 %v366_v33, 0.0  ;;  %vm398_vm14 = vcmp.gt.f32.partialorder %v366_v33, 1e-08 }
 0x212   :  { %v493_v43 = vsel %vm398_vm14, 1.0, %v575_v3  ;;  %v257_v44 = vpop.permute.xlu1 %256 }
 0x213   :  { %v386_v45 = vsel %vm205_vm4, %v374_v40, 0.0  ;;  %v425_v46 = vsel %vm205_vm4, %v493_v43, 0.0  ;;  %v367_v47 = vsub.f32 %v257_v44, %v345_v36 }
 0x214   :  { %v387_v54 = vadd.f32 %v386_v45, %v385_v48  ;;  %v426_v55 = vadd.f32 %v425_v46, %v424_v49 }
 0x215   :  { %v375_v51 = vmax.f32 %v367_v47, 0.0  ;;  %vm399_vm0 = vcmp.gt.f32.partialorder %v367_v47, 1e-08 }
 0x216   :  { %v494_v56 = vsel %vm399_vm0, 1.0, %v575_v3  ;;  %v271_v57 = vpop.permute.xlu1 %270 }
 0x217   :  { %v388_v58 = vsel %vm205_vm4, %v375_v51, 0.0  ;;  %v427_v59 = vsel %vm205_vm4, %v494_v56, 0.0  ;;  %v369_v60 = vsub.f32 %v271_v57, %v353_v52 }
 0x218   :  { %v389_v61 = vadd.f32 %v388_v58, %v387_v54  ;;  %v428_v62 = vadd.f32 %v427_v59, %v426_v55 }
 0x219   :  { %v377_v1 = vmax.f32 %v369_v60, 0.0  ;;  %vm401_vm1 = vcmp.gt.f32.partialorder %v369_v60, 1e-08 }
 0x21a   :  { %v391_v18 = vadd.f32 %v390_v63, %v389_v61  ;;  %v430_v2 = vadd.f32 %v429_v0, %v428_v62  ;;  %v496_v4 = vsel %vm401_vm1, 1.0, %v575_v3 }
 0x21b   :  { %v392_v7 = vsel %vm205_vm4, %v377_v1, 0.0  ;;  %v431_v8 = vsel %vm205_vm4, %v496_v4, 0.0 }
 0x21c   :  { %v393_v9 = vadd.f32 %v392_v7, %v391_v18  ;;  %v432_v10 = vadd.f32 %v431_v8, %v430_v2 }
 0x21e   :  { %v434_v11 = vadd.f32 %v433_v5, %v393_v9  ;;  %v437_v12 = vadd.f32 %v436_v6, %v432_v10 }
 0x220   :  { %435 = vst.msk [vmem:[#allocation4] sm:$0xff] %vm205_vm4, %v434_v11  ;;  %438 = vst.msk [vmem:[#allocation5] sm:$0xff] %vm205_vm4, %v437_v12 }
 0x227   :  { %v453_v13 = vld [vmem:[#allocation5] sm:$0xff]  ;;  %v442_v14 = vld [vmem:[#allocation4] sm:$0xff] }
 0x228   :  { %v454_v15 = vsel %vm205_vm4, %v453_v13, 0.0  ;;  %v443_v3 = vsel %vm205_vm4, %v442_v14, 0.0 }
 0x229   :  { %455 = vadd.xlane.f32.xlu1 %v454_v15  ;;  %444 = vadd.xlane.f32.xlu0 %v443_v3 }
 0x2b6   :  { %v456_v16 = vpop.xlane.xlu1 %455  ;;  %v445_v17 = vpop.xlane.xlu0 %444 }
 0x2b7   :  { %v457_v19 = vrot.slane %v456_v16, 4  ;;  %v446_v20 = vrot.slane %v445_v17, 4 }
 0x2b9   :  { %v458_v21 = vadd.f32 %v457_v19, %v456_v16  ;;  %v447_v22 = vadd.f32 %v446_v20, %v445_v17 }
 0x2bb   :  { %v459_v23 = vrot.slane %v458_v21, 2  ;;  %v448_v24 = vrot.slane %v447_v22, 2 }
 0x2bd   :  { %v460_v25 = vadd.f32 %v459_v23, %v458_v21  ;;  %v449_v26 = vadd.f32 %v448_v24, %v447_v22 }
 0x2bf   :  { %v450_v27 = vrot.slane %v449_v26, 1  ;;  %v461_v28 = vrot.slane %v460_v25, 1 }
 0x2c1   :  { %v451_v29 = vadd.f32 %v450_v27, %v449_v26  ;;  %v462_v30 = vadd.f32 %v461_v28, %v460_v25 }
 0x2c3   :  { %504 = vpush %v451_v29 }
 0x2c4   :  { %506 = vpush %v462_v30 }
 0x2f4   :  { %s505_s0 = spop %504 }
 0x2f5   :  { %s507_s1 = spop %506 }
 0x2f6   :  { %s464_s23 = sadd.f32 1e-08, %s507_s1 }
 0x2f8   :  { %v465_v31 = vstv %s464_s23 }
 0x2f9   :  { %524 = vrcp.f32 %v465_v31 }
 0x303   :  { %v525_v32 = vpop.eup %524 }
 0x304   :  { %508 = vpush %v525_v32 }
 0x335   :  { %s509_s26 = spop %508 }
 0x336   :  { %s468_s27 = smul.f32 %s509_s26, %s505_s0 }
 0x338   :  { %v469_v33 = vstv %s468_s27 }
 0x339   :  { %471 = vst.msk [vmem:[#allocation9] sm:$0x1] %vm470_vm2, %v469_v33 }
 0x33a   :  { %559 = shalt.err (!%p556_p12)
}
 0x33b   :  { %s560_s4 = scalar_lea.hbm %s674_s2, 16 }
 0x33c   :  { %p561_p13 = scmp.ne.s32.totalorder %s674_s2, %s560_s4  ;;  %p564_p0 = scmp.lt.u32.totalorder %s560_s4, %s674_s2 }
 0x33e   :  { %p566_p1 = pnand %p564_p0, %p561_p13 }
 0x340   :  { %569 = shalt.err (!%p566_p1)
}
 0x341   :  { %481 = dma.vmem_to_hbm [thread:$0]  %s479_s25, 16, %s674_s2, [#allocation8]  }
 0x342   :  { %572 = dma.done.wait [#allocation8], 16  }
 0x343   :  { %573 = vsyncadd [#allocation8], 4294967280 }
 0x344   :  { %485 = vsyncpa [#allocation7], 1 }
 0x345   :  { %486 = vsyncpa [#allocation8], 1 }

</bundles_post_ra>
